<compile_context>
chip_gen: v7x
topology: tpu7x:2x2x1
jax: 0.10.0
libtpu: 0.0.40
codegen_flags: <defaults>
</compile_context>

<pallas_src>
import functools

import jax
import jax.numpy as jnp
from jax import lax
from jax.experimental import pallas as pl
from jax.experimental.pallas import tpu as pltpu


_VMEM_BUDGET = 20 * 1024 * 1024          # conservative plan across v5e/v6e/v7x
_TARGET_TILE_BYTES = 2 * 1024 * 1024     # ~2 MiB per input tile per buffer


def _round_up(x, m):
    return ((x + m - 1) // m) * m


def _cdiv(a, b):
    return (a + b - 1) // b


def _make_distill_kernel(tile_b, n_inner, batch, inv_temp, needs_mask):
    """Builds the fused KL + MSE partial-sum kernel (all args are compile-time)."""

    def kernel(s_ref, t_ref, y_ref, o_ref, kl_acc, sq_acc):
        k = pl.program_id(1)

        @pl.when(k == 0)
        def _():
            kl_acc[...] = jnp.zeros_like(kl_acc)
            sq_acc[...] = jnp.zeros_like(sq_acc)

        # Widen to f32 inside the kernel only (inputs may be bf16 in HBM).
        s = s_ref[...].astype(jnp.float32)
        t = t_ref[...].astype(jnp.float32)
        y = y_ref[...].astype(jnp.float32)

        # Student: temperature-scaled log-softmax (row-wise, numerically stable).
        zs = s * inv_temp
        zs = zs - jnp.max(zs, axis=-1, keepdims=True)
        log_q = zs - jnp.log(jnp.sum(jnp.exp(zs), axis=-1, keepdims=True))

        # Teacher: compute exp(zt) once and reuse for both softmax and
        # log-softmax (avoids a third full-tile transcendental).
        zt = t * inv_temp
        zt = zt - jnp.max(zt, axis=-1, keepdims=True)
        et = jnp.exp(zt)
        sum_t = jnp.sum(et, axis=-1, keepdims=True)
        log_p = zt - jnp.log(sum_t)
        p = et * (1.0 / sum_t)

        # Row-reduce the contributions immediately (XLU); accumulate per-row.
        kl_row = jnp.sum(p * (log_p - log_q), axis=-1, keepdims=True)   # (tile_b, 1)
        d = s - y
        sq_row = jnp.sum(d * d, axis=-1, keepdims=True)                 # (tile_b, 1)

        if needs_mask:
            # Per-row validity mask (covers both the ragged tail block and any
            # phantom block from the dual-TC split).  Applied after the row
            # reduce, so it is tile_b selects, not tile_b * C.  jnp.where
            # blocks NaN/Inf leakage from garbage padded rows.
            blk = pl.program_id(0) * n_inner + k
            row_ids = blk * tile_b + lax.broadcasted_iota(jnp.int32, (tile_b, 1), 0)
            valid = row_ids < batch
            kl_row = jnp.where(valid, kl_row, 0.0)
            sq_row = jnp.where(valid, sq_row, 0.0)

        kl_acc[...] += kl_row
        sq_acc[...] += sq_row

        @pl.when(k == n_inner - 1)
        def _():
            kl_s = jnp.sum(kl_acc[...])
            sq_s = jnp.sum(sq_acc[...])
            # Single unmasked full-block lane-dense store; sums live in lanes 0/1.
            lane = lax.broadcasted_iota(jnp.int32, (1, 8, 128), 2)
            o_ref[...] = jnp.where(lane == 0, kl_s, jnp.where(lane == 1, sq_s, 0.0))

    return kernel


def _pick_tile_rows(batch, n_classes, itemsize):
    """Dtype-aware, bytes-targeted row tile for a bandwidth-bound streaming
    reduction: ~2 MiB per input tile per buffer, ~20 MiB total VMEM plan."""
    c_pad = _round_up(n_classes, 128)
    row_mult = {1: 32, 2: 16}.get(itemsize, 8)        # sublane packing granule
    in_row_bytes = c_pad * itemsize                   # one input buffer, per row
    # 3 inputs x double-buffered + 2 per-row f32 accumulators (lane-padded to 128)
    per_row_vmem = 3 * 2 * in_row_bytes + 2 * 128 * 4
    max_rows = min(max(row_mult, _TARGET_TILE_BYTES // in_row_bytes),
                   max(row_mult, _VMEM_BUDGET // per_row_vmem))
    if batch <= max_rows:
        # Whole batch fits in one tile; still split in two for dual-TC v7x when
        # each half remains a large DMA (>= ~1 MiB per input tile).
        half = _round_up(_cdiv(batch, 2), row_mult)
        if half < batch and half * in_row_bytes >= (1 << 20):
            return half, row_mult
        return batch, row_mult
    tile = max(row_mult, (max_rows // row_mult) * row_mult)
    return tile, row_mult
    # TODO(synk): for extremely large n_classes (class-axis >> VMEM budget at the
    # minimum row tile), tile the class axis with an online-softmax reduction.


def _distill_sums_pallas(student, teacher, target, temperature):
    """Returns (sum_over_all p*(log p - log q), sum_over_all (s - target)^2)."""
    assert student.shape == teacher.shape == target.shape
    # TODO(synk): only rank-2 [batch, classes] logits are supported (dim=1 softmax).
    assert student.ndim == 2, "expected [batch, num_classes] logits"
    B, C = student.shape

    max_itemsize = max(student.dtype.itemsize, teacher.dtype.itemsize,
                       target.dtype.itemsize)
    tile_b, row_mult = _pick_tile_rows(B, C, max_itemsize)
    n_blocks = _cdiv(B, tile_b)

    # Prefer an even block count (clean 2-way split across v7x TensorCores) by
    # nudging the tile a bit smaller when that is cheaply possible.
    if n_blocks >= 2 and n_blocks % 2 == 1:
        cand = _round_up(_cdiv(B, n_blocks + 1), row_mult)
        if row_mult <= cand < tile_b and _cdiv(B, cand) % 2 == 0:
            tile_b = cand
            n_blocks = _cdiv(B, tile_b)

    # Always engage both TensorCores when there is more than one block; an odd
    # block count just gets one masked phantom block on the second chunk.
    n_par = 2 if n_blocks >= 2 else 1
    n_inner = _cdiv(n_blocks, n_par)
    has_phantom = (n_par * n_inner) != n_blocks
    needs_mask = (n_par * n_inner * tile_b) != B

    # VMEM plan + explicit scoped limit (v5e defaults to 16 MiB scoped).
    c_pad = _round_up(C, 128)
    tile_rows_pad = _round_up(tile_b, row_mult)
    acc_bytes = 2 * _round_up(tile_b, 8) * 128 * 4
    use_deep = (tile_b <= 2 * row_mult and n_inner >= 4 and
                3 * 3 * tile_rows_pad * c_pad * max_itemsize + acc_bytes
                <= _VMEM_BUDGET)
    buf_count = 3 if use_deep else 2
    planned = (3 * buf_count * tile_rows_pad * c_pad * max_itemsize
               + acc_bytes + 2 * n_par * 8 * 128 * 4)
    vmem_limit = min(max(int(planned * 1.5) + (1 << 20), 16 * 1024 * 1024),
                     48 * 1024 * 1024)

    kernel = _make_distill_kernel(tile_b, n_inner, B, float(1.0 / temperature),
                                  needs_mask)

    if has_phantom:
        def idx_map(p, k):
            # Clamp so the phantom block re-reads a real block (its rows are
            # fully masked in the kernel); keeps the auto-DMA in bounds.
            return (jnp.minimum(p * n_inner + k, n_blocks - 1), 0)
    else:
        def idx_map(p, k):
            return (p * n_inner + k, 0)

    if use_deep:
        # Small row tiles (huge C) expose DMA latency on v7x; buffer deeper.
        in_spec = pl.BlockSpec((tile_b, C), idx_map, pipeline_mode=pl.Buffered(3))
    else:
        in_spec = pl.BlockSpec((tile_b, C), idx_map)

    out = pl.pallas_call(
        kernel,
        out_shape=jax.ShapeDtypeStruct((n_par, 8, 128), jnp.float32),
        grid_spec=pltpu.PrefetchScalarGridSpec(
            num_scalar_prefetch=0,
            grid=(n_par, n_inner),
            in_specs=[in_spec, in_spec, in_spec],
            out_specs=pl.BlockSpec((1, 8, 128), lambda p, k: (p, 0, 0)),
            scratch_shapes=[
                pltpu.VMEM((tile_b, 1), jnp.float32),   # per-row KL partials
                pltpu.VMEM((tile_b, 1), jnp.float32),   # per-row sq-diff partials
            ],
        ),
        compiler_params=pltpu.CompilerParams(
            dimension_semantics=("parallel", "arbitrary"),
            vmem_limit_bytes=vmem_limit,
        ),
    )(student, teacher, target)

    kl_sum = jnp.sum(out[:, 0, 0])
    sq_sum = jnp.sum(out[:, 0, 1])
    return kl_sum, sq_sum


def _distillation_loss(student_output, teacher_output, target, *, temperature, alpha):
    B, C = student_output.shape
    kl_sum, sq_sum = _distill_sums_pallas(student_output, teacher_output, target,
                                          temperature)
    n_batch = jnp.float32(max(B, 1))
    n_elems = jnp.float32(max(B * C, 1))
    distill_loss = (kl_sum / n_batch) * jnp.float32(temperature ** 2)   # batchmean * T^2
    task_loss = sq_sum / n_elems                                        # mse mean
    total_loss = alpha * distill_loss + (1.0 - alpha) * task_loss
    return total_loss, distill_loss, task_loss


class DistillationLoss:
    """JAX/Pallas port of the PyTorch DistillationLoss module."""

    def __init__(self, temperature: float = 4.0, alpha: float = 0.7):
        self.temperature = float(temperature)
        self.alpha = float(alpha)
        self._fn = jax.jit(functools.partial(
            _distillation_loss, temperature=self.temperature, alpha=self.alpha))

    def forward(self, student_output, teacher_output, target):
        return self._fn(student_output, teacher_output, target)

    __call__ = forward


if __name__ == "__main__":
    key = jax.random.PRNGKey(0)
    k1, k2, k3 = jax.random.split(key, 3)

    B, C = 8, 32   # small classification-logit shapes: [batch, num_classes]
    student = jax.random.normal(k1, (B, C), dtype=jnp.float32)
    teacher = jax.random.normal(k2, (B, C), dtype=jnp.float32)
    target = jax.random.normal(k3, (B, C), dtype=jnp.float32)

    module = DistillationLoss(temperature=4.0, alpha=0.7)
    total, distill, task = module(student, teacher, target)
    total = jax.block_until_ready(total)

    # Pure-JAX reference (same semantics as the PyTorch module).
    T, alpha = 4.0, 0.7
    log_q = jax.nn.log_softmax(student / T, axis=1)
    log_p = jax.nn.log_softmax(teacher / T, axis=1)
    p = jnp.exp(log_p)
    distill_ref = (jnp.sum(p * (log_p - log_q)) / B) * T ** 2
    task_ref = jnp.mean((student - target) ** 2)
    total_ref = alpha * distill_ref + (1.0 - alpha) * task_ref

    assert jnp.allclose(distill, distill_ref, rtol=1e-5, atol=1e-5), (distill, distill_ref)
    assert jnp.allclose(task, task_ref, rtol=1e-5, atol=1e-5), (task, task_ref)
    assert jnp.allclose(total, total_ref, rtol=1e-5, atol=1e-5), (total, total_ref)

    print("KERNEL_OK")
</pallas_src>

<mosaic_0001>
module attributes {stable_mosaic.version = 11 : i64} {
  func.func @kernel(%arg0: i32, %arg1: i32, %arg2: memref<8x32xf32, #tpu.memory_space<vmem>>, %arg3: memref<8x32xf32, #tpu.memory_space<vmem>>, %arg4: memref<8x32xf32, #tpu.memory_space<vmem>>, %arg5: memref<1x8x128xf32, #tpu.memory_space<vmem>>, %arg6: memref<8x1xf32, #tpu.memory_space<vmem>>, %arg7: memref<8x1xf32, #tpu.memory_space<vmem>>) attributes {dimension_semantics = [#tpu.dimension_semantics<parallel>, #tpu.dimension_semantics<arbitrary>], iteration_bounds = array<i64: 1, 1>, scalar_prefetch = 0 : i64, scratch_operands = 2 : i64, tpu.core_type = #tpu.core_type<tc>, window_params = [{transform_indices = @transform_0, window_bounds = array<i64: 8, 32>}, {transform_indices = @transform_1, window_bounds = array<i64: 8, 32>}, {transform_indices = @transform_2, window_bounds = array<i64: 8, 32>}, {transform_indices = @transform_3, window_bounds = array<i64: 1, 8, 128>}]} {
    %c0_i32 = arith.constant 0 : i32
    %0 = arith.cmpi eq, %arg1, %c0_i32 : i32
    %1 = arith.extui %0 : i1 to i32
    %c0_i32_0 = arith.constant 0 : i32
    %2 = arith.cmpi ne, %1, %c0_i32_0 : i32
    scf.if %2 {
      %cst_24 = arith.constant 0.000000e+00 : f32
      %51 = vector.broadcast %cst_24 : f32 to vector<8x1xf32>
      %c0_25 = arith.constant 0 : index
      %c0_26 = arith.constant 0 : index
      %52 = vector.load %arg6[%c0_25, %c0_26] : memref<8x1xf32, #tpu.memory_space<vmem>>, vector<8x1xf32>
      tpu.vector_store %arg6[%c0_25, %c0_26], %51 {strides = array<i32>} : memref<8x1xf32, #tpu.memory_space<vmem>>, vector<8x1xf32>,
      %cst_27 = arith.constant 0.000000e+00 : f32
      %53 = vector.broadcast %cst_27 : f32 to vector<8x1xf32>
      %c0_28 = arith.constant 0 : index
      %c0_29 = arith.constant 0 : index
      %54 = vector.load %arg7[%c0_28, %c0_29] : memref<8x1xf32, #tpu.memory_space<vmem>>, vector<8x1xf32>
      tpu.vector_store %arg7[%c0_28, %c0_29], %53 {strides = array<i32>} : memref<8x1xf32, #tpu.memory_space<vmem>>, vector<8x1xf32>,
    } else {
    }
    %c0 = arith.constant 0 : index
    %c0_1 = arith.constant 0 : index
    %3 = vector.load %arg2[%c0, %c0_1] : memref<8x32xf32, #tpu.memory_space<vmem>>, vector<8x32xf32>
    %c0_2 = arith.constant 0 : index
    %c0_3 = arith.constant 0 : index
    %4 = vector.load %arg3[%c0_2, %c0_3] : memref<8x32xf32, #tpu.memory_space<vmem>>, vector<8x32xf32>
    %c0_4 = arith.constant 0 : index
    %c0_5 = arith.constant 0 : index
    %5 = vector.load %arg4[%c0_4, %c0_5] : memref<8x32xf32, #tpu.memory_space<vmem>>, vector<8x32xf32>
    %cst = arith.constant 2.500000e-01 : f32
    %6 = vector.broadcast %cst : f32 to vector<8x32xf32>
    %7 = arith.mulf %3, %6 : vector<8x32xf32>
    %cst_6 = arith.constant dense<0xFF800000> : vector<8xf32>
    %8 = vector.multi_reduction <maximumf>, %7, %cst_6 [1] : vector<8x32xf32> to vector<8xf32>
    %9 = vector.shape_cast %8 : vector<8xf32> to vector<8x1xf32>
    %10 = vector.broadcast %9 : vector<8x1xf32> to vector<8x32xf32>
    %11 = arith.subf %7, %10 : vector<8x32xf32>
    %12 = math.exp %11 : vector<8x32xf32>
    %cst_7 = arith.constant dense<0.000000e+00> : vector<8xf32>
    %13 = vector.multi_reduction <add>, %12, %cst_7 [1] : vector<8x32xf32> to vector<8xf32>
    %14 = vector.shape_cast %13 : vector<8xf32> to vector<8x1xf32>
    %15 = math.log %14 : vector<8x1xf32>
    %16 = vector.broadcast %15 : vector<8x1xf32> to vector<8x32xf32>
    %17 = arith.subf %11, %16 : vector<8x32xf32>
    %cst_8 = arith.constant 2.500000e-01 : f32
    %18 = vector.broadcast %cst_8 : f32 to vector<8x32xf32>
    %19 = arith.mulf %4, %18 : vector<8x32xf32>
    %cst_9 = arith.constant dense<0xFF800000> : vector<8xf32>
    %20 = vector.multi_reduction <maximumf>, %19, %cst_9 [1] : vector<8x32xf32> to vector<8xf32>
    %21 = vector.shape_cast %20 : vector<8xf32> to vector<8x1xf32>
    %22 = vector.broadcast %21 : vector<8x1xf32> to vector<8x32xf32>
    %23 = arith.subf %19, %22 : vector<8x32xf32>
    %24 = math.exp %23 : vector<8x32xf32>
    %cst_10 = arith.constant dense<0.000000e+00> : vector<8xf32>
    %25 = vector.multi_reduction <add>, %24, %cst_10 [1] : vector<8x32xf32> to vector<8xf32>
    %26 = vector.shape_cast %25 : vector<8xf32> to vector<8x1xf32>
    %27 = math.log %26 : vector<8x1xf32>
    %28 = vector.broadcast %27 : vector<8x1xf32> to vector<8x32xf32>
    %29 = arith.subf %23, %28 : vector<8x32xf32>
    %cst_11 = arith.constant 1.000000e+00 : f32
    %30 = vector.broadcast %cst_11 : f32 to vector<8x1xf32>
    %31 = arith.divf %30, %26 : vector<8x1xf32>
    %32 = vector.broadcast %31 : vector<8x1xf32> to vector<8x32xf32>
    %33 = arith.mulf %24, %32 : vector<8x32xf32>
    %34 = arith.subf %29, %17 : vector<8x32xf32>
    %35 = arith.mulf %33, %34 : vector<8x32xf32>
    %cst_12 = arith.constant dense<0.000000e+00> : vector<8xf32>
    %36 = vector.multi_reduction <add>, %35, %cst_12 [1] : vector<8x32xf32> to vector<8xf32>
    %37 = vector.shape_cast %36 : vector<8xf32> to vector<8x1xf32>
    %38 = arith.subf %3, %5 : vector<8x32xf32>
    %39 = arith.mulf %38, %38 : vector<8x32xf32>
    %cst_13 = arith.constant dense<0.000000e+00> : vector<8xf32>
    %40 = vector.multi_reduction <add>, %39, %cst_13 [1] : vector<8x32xf32> to vector<8xf32>
    %41 = vector.shape_cast %40 : vector<8xf32> to vector<8x1xf32>
    %c0_14 = arith.constant 0 : index
    %c0_15 = arith.constant 0 : index
    %42 = vector.load %arg6[%c0_14, %c0_15] : memref<8x1xf32, #tpu.memory_space<vmem>>, vector<8x1xf32>
    %43 = arith.addf %42, %37 : vector<8x1xf32>
    %c0_16 = arith.constant 0 : index
    %c0_17 = arith.constant 0 : index
    %44 = vector.load %arg6[%c0_16, %c0_17] : memref<8x1xf32, #tpu.memory_space<vmem>>, vector<8x1xf32>
    tpu.vector_store %arg6[%c0_16, %c0_17], %43 {strides = array<i32>} : memref<8x1xf32, #tpu.memory_space<vmem>>, vector<8x1xf32>,
    %c0_18 = arith.constant 0 : index
    %c0_19 = arith.constant 0 : index
    %45 = vector.load %arg7[%c0_18, %c0_19] : memref<8x1xf32, #tpu.memory_space<vmem>>, vector<8x1xf32>
    %46 = arith.addf %45, %41 : vector<8x1xf32>
    %c0_20 = arith.constant 0 : index
    %c0_21 = arith.constant 0 : index
    %47 = vector.load %arg7[%c0_20, %c0_21] : memref<8x1xf32, #tpu.memory_space<vmem>>, vector<8x1xf32>
    tpu.vector_store %arg7[%c0_20, %c0_21], %46 {strides = array<i32>} : memref<8x1xf32, #tpu.memory_space<vmem>>, vector<8x1xf32>,
    %c0_i32_22 = arith.constant 0 : i32
    %48 = arith.cmpi eq, %arg1, %c0_i32_22 : i32
    %49 = arith.extui %48 : i1 to i32
    %c0_i32_23 = arith.constant 0 : i32
    %50 = arith.cmpi ne, %49, %c0_i32_23 : i32
    scf.if %50 {
      %c0_24 = arith.constant 0 : index
      %c0_25 = arith.constant 0 : index
      %51 = vector.load %arg6[%c0_24, %c0_25] : memref<8x1xf32, #tpu.memory_space<vmem>>, vector<8x1xf32>
      %52 = vector.shape_cast %51 : vector<8x1xf32> to vector<1x8x1xf32>
      %cst_26 = arith.constant dense<0.000000e+00> : vector<1xf32>
      %53 = vector.multi_reduction <add>, %52, %cst_26 [1, 2] : vector<1x8x1xf32> to vector<1xf32>
      %54 = vector.shape_cast %53 : vector<1xf32> to vector<1x1x1xf32>
      %55 = vector.extract %54[0, 0, 0] : f32 from vector<1x1x1xf32>
      %c0_27 = arith.constant 0 : index
      %c0_28 = arith.constant 0 : index
      %56 = vector.load %arg7[%c0_27, %c0_28] : memref<8x1xf32, #tpu.memory_space<vmem>>, vector<8x1xf32>
      %57 = vector.shape_cast %56 : vector<8x1xf32> to vector<1x8x1xf32>
      %cst_29 = arith.constant dense<0.000000e+00> : vector<1xf32>
      %58 = vector.multi_reduction <add>, %57, %cst_29 [1, 2] : vector<1x8x1xf32> to vector<1xf32>
      %59 = vector.shape_cast %58 : vector<1xf32> to vector<1x1x1xf32>
      %60 = vector.extract %59[0, 0, 0] : f32 from vector<1x1x1xf32>
      %61 = tpu.iota {dimensions = array<i32: 2>} : vector<1x8x128xi32>
      %c0_i32_30 = arith.constant 0 : i32
      %62 = vector.broadcast %c0_i32_30 : i32 to vector<1x8x128xi32>
      %63 = arith.cmpi eq, %61, %62 : vector<1x8x128xi32>
      %c1_i32 = arith.constant 1 : i32
      %64 = vector.broadcast %c1_i32 : i32 to vector<1x8x128xi32>
      %65 = arith.cmpi eq, %61, %64 : vector<1x8x128xi32>
      %cst_31 = arith.constant 0.000000e+00 : f32
      %66 = vector.broadcast %60 : f32 to vector<1x8x128xf32>
      %67 = vector.broadcast %cst_31 : f32 to vector<1x8x128xf32>
      %68 = arith.select %65, %66, %67 : vector<1x8x128xi1>, vector<1x8x128xf32>
      %69 = vector.broadcast %55 : f32 to vector<1x8x128xf32>
      %70 = arith.select %63, %69, %68 : vector<1x8x128xi1>, vector<1x8x128xf32>
      %c0_32 = arith.constant 0 : index
      %c0_33 = arith.constant 0 : index
      %c0_34 = arith.constant 0 : index
      %71 = vector.load %arg5[%c0_32, %c0_33, %c0_34] : memref<1x8x128xf32, #tpu.memory_space<vmem>>, vector<1x8x128xf32>
      tpu.vector_store %arg5[%c0_32, %c0_33, %c0_34], %70 {strides = array<i32>} : memref<1x8x128xf32, #tpu.memory_space<vmem>>, vector<1x8x128xf32>,
    } else {
    }
    return
  }
  func.func @transform_0(%arg0: i32, %arg1: i32) -> (i32, i32) {
    %c1_i32 = arith.constant 1 : i32
    %0 = arith.muli %arg0, %c1_i32 : i32
    %1 = arith.addi %0, %arg1 : i32
    %c0_i32 = arith.constant 0 : i32
    %c0_i32_0 = arith.constant 0 : i32
    return %1, %c0_i32 : i32, i32
  }
  func.func @transform_1(%arg0: i32, %arg1: i32) -> (i32, i32) {
    %c1_i32 = arith.constant 1 : i32
    %0 = arith.muli %arg0, %c1_i32 : i32
    %1 = arith.addi %0, %arg1 : i32
    %c0_i32 = arith.constant 0 : i32
    %c0_i32_0 = arith.constant 0 : i32
    return %1, %c0_i32 : i32, i32
  }
  func.func @transform_2(%arg0: i32, %arg1: i32) -> (i32, i32) {
    %c1_i32 = arith.constant 1 : i32
    %0 = arith.muli %arg0, %c1_i32 : i32
    %1 = arith.addi %0, %arg1 : i32
    %c0_i32 = arith.constant 0 : i32
    %c0_i32_0 = arith.constant 0 : i32
    return %1, %c0_i32 : i32, i32
  }
  func.func @transform_3(%arg0: i32, %arg1: i32) -> (i32, i32, i32) {
    %c0_i32 = arith.constant 0 : i32
    %c0_i32_0 = arith.constant 0 : i32
    %c0_i32_1 = arith.constant 0 : i32
    return %arg0, %c0_i32, %c0_i32_0 : i32, i32, i32
  }
}

</mosaic_0001>

<bundles_post_ra>
// kernel: _distillation_loss.1
= control target key start
LH: loop header
LB: loop body
LE: loop exit
PB: predicated region body
PF: predicated region fallthrough
CT: control target
= control target key end

     0   :  { %8 = vsyncpa [#allocation5], 0  ;;  %s321_s0 = inlined_call_operand.hbm [shape: f32[8,32], index: 0, kind: input, shape index: {}]   ;;  %s322_s1 = inlined_call_operand.hbm [shape: f32[8,32], index: 1, kind: input, shape index: {}]   ;;  %s323_s2 = inlined_call_operand.hbm [shape: f32[8,32], index: 2, kind: input, shape index: {}]   ;;  %s324_s3 = inlined_call_operand.vmem [shape: f32[1,8,128], index: 3, kind: output, shape index: {}]  }
   0x1   :  { %9 = vsyncpa [#allocation7], 0  ;;  %s246_s12 = smov [#allocation6]   ;;  %s247_s14 = smov [#allocation4]  }
   0x2   :  { %s32_s13 = sshll.u32 %s246_s12, 4  ;;  %s19_s15 = sshll.u32 %s247_s14, 4  ;;  %s33_s13 = int_to_ptr.vmem [resolvable:$true] %s32_s13  ;;  %s20_s15 = int_to_ptr.vmem [resolvable:$true] %s19_s15 }
   0x3   :  { %s176_s18 = scalar_lea.hbm %s322_s1, 128 }
   0x4   :  { %p177_p0 = scmp.ne.s32.totalorder %s322_s1, %s176_s18  ;;  %p180_p1 = scmp.lt.u32.totalorder %s176_s18, %s322_s1 }
   0x6   :  { %p182_p2 = pnand %p180_p1, %p177_p0 }
   0x8   :  { %185 = shalt.err (!%p182_p2)
}
   0x9   :  { %s186_s23 = scalar_lea.vmem %s33_s13, 128  ;;  %p191_p4 = scmp.lt.s32.totalorder %s33_s13, %s33_s13 }
   0xa   :  { %p187_p3 = scmp.ne.s32.totalorder %s33_s13, %s186_s23  ;;  %p192_p5 = scmp.lt.s32.totalorder %s186_s23, %s186_s23 }
   0xc   :  { %p193_p6 = por %p192_p5, %p191_p4 }
   0xe   :  { %p194_p7 = pnand %p193_p6, %p187_p3 }
  0x10   :  { %197 = shalt.err (!%p194_p7)
}
  0x11   :  { %35 = dma.hbm_to_vmem [thread:$0]  %s322_s1, 128, %s33_s13, [#allocation7]  }
  0x12   :  { %s198_s28 = scalar_lea.hbm %s321_s0, 128 }
  0x13   :  { %p199_p8 = scmp.ne.s32.totalorder %s321_s0, %s198_s28  ;;  %p202_p9 = scmp.lt.u32.totalorder %s198_s28, %s321_s0 }
  0x15   :  { %p204_p10 = pnand %p202_p9, %p199_p8 }
  0x17   :  { %207 = shalt.err (!%p204_p10)
}
  0x18   :  { %s208_s6 = scalar_lea.vmem %s20_s15, 128  ;;  %p213_p12 = scmp.lt.s32.totalorder %s20_s15, %s20_s15 }
  0x19   :  { %p209_p11 = scmp.ne.s32.totalorder %s20_s15, %s208_s6  ;;  %p214_p13 = scmp.lt.s32.totalorder %s208_s6, %s208_s6 }
  0x1b   :  { %p215_p0 = por %p214_p13, %p213_p12 }
  0x1d   :  { %p216_p1 = pnand %p215_p0, %p209_p11 }
  0x1f   :  { %219 = shalt.err (!%p216_p1)
}
  0x20   :  { %22 = dma.hbm_to_vmem [thread:$0]  %s321_s0, 128, %s20_s15, [#allocation5]  }
  0x21   :  { %s248_s8 = smov [#allocation8]   ;;  %s220_s12 = scalar_lea.hbm %s323_s2, 128 }
  0x22   :  { %s45_s9 = sshll.u32 %s248_s8, 4  ;;  %p221_p2 = scmp.ne.s32.totalorder %s323_s2, %s220_s12  ;;  %s46_s9 = int_to_ptr.vmem [resolvable:$true] %s45_s9 }
  0x23   :  { %p224_p3 = scmp.lt.u32.totalorder %s220_s12, %s323_s2 }
  0x25   :  { %p226_p4 = pnand %p224_p3, %p221_p2 }
  0x27   :  { %229 = shalt.err (!%p226_p4)
}
  0x28   :  { %s230_s18 = scalar_lea.vmem %s46_s9, 128  ;;  %p235_p6 = scmp.lt.s32.totalorder %s46_s9, %s46_s9 }
  0x29   :  { %p231_p5 = scmp.ne.s32.totalorder %s46_s9, %s230_s18  ;;  %p236_p7 = scmp.lt.s32.totalorder %s230_s18, %s230_s18 }
  0x2b   :  { %p237_p8 = por %p236_p7, %p235_p6 }
  0x2d   :  { %p238_p9 = pnand %p237_p8, %p231_p5 }
  0x2f   :  { %241 = shalt.err (!%p238_p9)
}
  0x30   :  { %48 = dma.hbm_to_vmem [thread:$0]  %s323_s2, 128, %s46_s9, [#allocation7]  }
  0x31   :  { %242 = dma.done.wait [#allocation5], 128  }
  0x32   :  { %243 = vsyncadd [#allocation5], 4294967168 }
  0x33   :  { %244 = dma.done.wait [#allocation7], 256  }
  0x34   :  { %245 = vsyncadd [#allocation7], 4294967040  ;;  %v68_v0 = vld [vmem:[#allocation4] sm:$0xff]  ;;  %vm72_vm0 = vcmask 261120   ;;  %v69_v1 = vld [vmem:[#allocation6] sm:$0xff]  ;;  %vm65_vm1 = vcmask 7168   ;;  %v143_v58 = vlaneseq }
  0x35   :  { %v71_v2 = vmul.f32 0.25, %v68_v0  ;;  %v85_v3 = vmul.f32 0.25, %v69_v1  ;;  %v70_v16 = vld [vmem:[#allocation8] sm:$0xff]  ;;  %v249_v20 = vmov 0.0  }
  0x36   :  { %v106_v17 = vsub.f32 %v68_v0, %v70_v16  ;;  %67 = vst.msk [vmem:[#allocation3] sm:$0xff] %vm65_vm1, %v249_v20  ;;  %66 = vst.msk [vmem:[#allocation2] sm:$0xff] %vm65_vm1, %v249_v20  ;;  %v144_v59 = vand.u32 127, %v143_v58 }
  0x37   :  { %v73_v4 = vsel %vm72_vm0, %v71_v2, -inf  ;;  %v86_v5 = vsel %vm72_vm0, %v85_v3, -inf }
  0x38   :  { %74 = vmax.xlane.f32.xlu0 %v73_v4  ;;  %v107_v18 = vmul.f32 %v106_v17, %v106_v17  ;;  %vm146_vm2 = vcmp.eq.s32.totalorder %v144_v59, 1  ;;  %vm145_vm3 = vcmp.eq.s32.totalorder %v144_v59, 0 }
  0x3a   :  { %v108_v19 = vsel %vm72_vm0, %v107_v18, 0.0 }
  0x3c   :  { %87 = vmax.xlane.f32.xlu0 %v86_v5 }
  0x3d   :  { %v115_v34 = vld [vmem:[#allocation3] sm:$0xff]  ;;  %v111_v39 = vld [vmem:[#allocation2] sm:$0xff] }
  0xc5   :  { %v75_v6 = vpop.xlane.xlu0 %74 }
  0xc6   :  { %v76_v7 = vsub.f32 %v71_v2, %v75_v6 }
  0xc8   :  { %v77_v8 = vmul.f32 1.442695, %v76_v7 }
  0xc9   :  { %v88_v9 = vpop.xlane.xlu0 %87 }
  0xca   :  { %166 = vpow2.f32 %v77_v8  ;;  %v89_v10 = vsub.f32 %v85_v3, %v88_v9 }
  0xcc   :  { %v90_v11 = vmul.f32 1.442695, %v89_v10 }
  0xce   :  { %168 = vpow2.f32 %v90_v11 }
  0xd4   :  { %v167_v12 = vpop.eup %166 }
  0xd5   :  { %v79_v13 = vsel %vm72_vm0, %v167_v12, 0.0 }
  0xd6   :  { %80 = vadd.xlane.f32.xlu1 %v79_v13 }
  0xd8   :  { %v169_v14 = vpop.eup %168 }
  0xd9   :  { %v92_v15 = vsel %vm72_vm0, %v169_v14, 0.0 }
  0xda   :  { %93 = vadd.xlane.f32.xlu1 %v92_v15 }
  0xde   :  { %109 = vadd.xlane.f32.xlu1 %v108_v19 }
 0x163   :  { %v81_v21 = vpop.xlane.xlu1 %80 }
 0x164   :  { %170 = vlog2.f32 %v81_v21 }
 0x167   :  { %v94_v22 = vpop.xlane.xlu1 %93 }
 0x168   :  { %172 = vlog2.f32 %v94_v22 }
 0x169   :  { %174 = vrcp.f32 %v94_v22 }
 0x16b   :  { %v110_v35 = vpop.xlane.xlu1 %109 }
 0x16c   :  { %v116_v36 = vadd.f32 %v115_v34, %v110_v35 }
 0x16e   :  { %v171_v23 = vpop.eup %170  ;;  %117 = vst.msk [vmem:[#allocation3] sm:$0xff] %vm65_vm1, %v116_v36 }
 0x16f   :  { %v83_v24 = vmul.f32 0.6931472, %v171_v23 }
 0x171   :  { %v84_v28 = vsub.f32 %v76_v7, %v83_v24 }
 0x172   :  { %v173_v25 = vpop.eup %172 }
 0x173   :  { %v96_v26 = vmul.f32 0.6931472, %v173_v25  ;;  %v175_v27 = vpop.eup %174 }
 0x174   :  { %v100_v30 = vmul.f32 %v175_v27, %v169_v14 }
 0x175   :  { %v97_v29 = vsub.f32 %v89_v10, %v96_v26  ;;  %v132_v37 = vld [vmem:[#allocation3] sm:$0xff] }
 0x176   :  { %v133_v38 = vsel %vm65_vm1, %v132_v37, 0.0 }
 0x177   :  { %v101_v31 = vsub.f32 %v97_v29, %v84_v28  ;;  %134 = vadd.xlane.f32.xlu1 %v133_v38 }
 0x179   :  { %v102_v32 = vmul.f32 %v101_v31, %v100_v30 }
 0x17b   :  { %v103_v33 = vsel %vm72_vm0, %v102_v32, 0.0 }
 0x17c   :  { %104 = vadd.xlane.f32.xlu0 %v103_v33 }
 0x204   :  { %v135_v44 = vpop.xlane.xlu1 %134 }
 0x205   :  { %v136_v45 = vrot.slane %v135_v44, 4 }
 0x207   :  { %v137_v46 = vadd.f32 %v136_v45, %v135_v44 }
 0x209   :  { %v105_v40 = vpop.xlane.xlu0 %104  ;;  %v138_v47 = vrot.slane %v137_v46, 2 }
 0x20a   :  { %v112_v41 = vadd.f32 %v111_v39, %v105_v40 }
 0x20b   :  { %v139_v51 = vadd.f32 %v138_v47, %v137_v46 }
 0x20c   :  { %114 = vst.msk [vmem:[#allocation2] sm:$0xff] %vm65_vm1, %v112_v41 }
 0x20d   :  { %v140_v54 = vrot.slane %v139_v51, 1 }
 0x20f   :  { %v141_v57 = vadd.f32 %v140_v54, %v139_v51 }
 0x213   :  { %v121_v42 = vld [vmem:[#allocation2] sm:$0xff] }
 0x214   :  { %v122_v43 = vsel %vm65_vm1, %v121_v42, 0.0 }
 0x215   :  { %123 = vadd.xlane.f32.xlu0 %v122_v43 }
 0x2a2   :  { %v124_v48 = vpop.xlane.xlu0 %123 }
 0x2a3   :  { %v125_v49 = vrot.slane %v124_v48, 4 }
 0x2a5   :  { %v126_v50 = vadd.f32 %v125_v49, %v124_v48 }
 0x2a7   :  { %v127_v52 = vrot.slane %v126_v50, 2 }
 0x2a9   :  { %v128_v53 = vadd.f32 %v127_v52, %v126_v50 }
 0x2ab   :  { %v129_v55 = vrot.slane %v128_v53, 1 }
 0x2ad   :  { %v130_v56 = vadd.f32 %v129_v55, %v128_v53 }
 0x2af   :  { %158 = vpush %v130_v56 }
 0x2b0   :  { %160 = vpush %v141_v57 }
 0x2e0   :  { %s159_s2 = spop %158 }
 0x2e1   :  { %v149_v60 = vstv %s159_s2  ;;  %s161_s19 = spop %160 }
 0x2e2   :  { %v147_v61 = vstv %s161_s19 }
 0x2e3   :  { %v148_v62 = vsel %vm146_vm2, %v147_v61, 0.0 }
 0x2e4   :  { %v150_v63 = vsel %vm145_vm3, %v149_v60, %v148_v62 }
 0x2e5   :  { %151 = vst [vmem:[%s324_s3] sm:$0xff] %v150_v63 }
 0x2e6   :  { %156 = vsyncpa [#allocation5], 1 }
 0x2e7   :  { %157 = vsyncpa [#allocation7], 1 }

</bundles_post_ra>
